<compile_context>
chip_gen: v5e
topology: v5e:2x2
jax: 0.10.0
libtpu: 0.0.40
codegen_flags: <defaults>
</compile_context>

<pallas_src>
import jax
import jax.numpy as jnp
from jax.experimental import pallas as pl
from jax.experimental.pallas import tpu as pltpu

_LANE = 128
_SUBLANE = 8


def _round_up(x, m):
    return ((x + m - 1) // m) * m


def _head_big_kernel(x_ref, w1_ref, b1_ref, w2_ref, b2_ref, o_ref):
    # TODO(synk): Dropout(0.3) is identity in eval mode; training-mode dropout
    # would use pltpu.prng_seed / pltpu.stateful_bernoulli.
    x = x_ref[...]                                                    # (TM, E) bf16
    h = jnp.dot(x, w1_ref[...], preferred_element_type=jnp.float32)   # MXU bf16, f32 acc
    h = jnp.tanh(h + b1_ref[...])                                     # f32 bias + tanh (EUP)
    logits = jnp.dot(h.astype(w2_ref.dtype), w2_ref[...],
                     preferred_element_type=jnp.float32) + b2_ref[...]
    o_ref[...] = logits.astype(o_ref.dtype)                           # lane-dense (TM, Cpad)


def _head_small_kernel(x_ref, w2_ref, b2_ref, o_ref):
    logits = jnp.dot(x_ref[...], w2_ref[...],
                     preferred_element_type=jnp.float32) + b2_ref[...]
    o_ref[...] = logits.astype(o_ref.dtype)


class ClassificationHead:
    """JAX/Pallas port of the PyTorch ClassificationHead (inference)."""

    def __init__(self, num_classes, embed_size, size, key=None):
        self.size = size
        self.num_classes = num_classes
        self.embed_size = embed_size
        self._c_pad = _round_up(max(num_classes, 1), _LANE)
        if key is None:
            key = jax.random.PRNGKey(0)
        k1, k2, k3, k4 = jax.random.split(key, 4)
        scale = 1.0 / jnp.sqrt(embed_size)
        # Weights stored pre-transposed [in, out]; bf16 operands for the MXU,
        # biases in f32.
        if self.size == 'big':
            self.w1 = jax.random.uniform(
                k1, (embed_size, embed_size), jnp.float32, -scale, scale
            ).astype(jnp.bfloat16)
            self.b1 = jax.random.uniform(
                k2, (1, embed_size), jnp.float32, -scale, scale)
        w2 = jax.random.uniform(
            k3, (embed_size, num_classes), jnp.float32, -scale, scale)
        b2 = jax.random.uniform(
            k4, (1, num_classes), jnp.float32, -scale, scale)
        # Zero-pad the class axis to a 128-lane multiple (lane-dense stores).
        self.w2 = jnp.pad(
            w2, ((0, 0), (0, self._c_pad - num_classes))).astype(jnp.bfloat16)
        self.b2 = jnp.pad(b2, ((0, 0), (0, self._c_pad - num_classes)))

    def __call__(self, hidden_state):
        *lead, e = hidden_state.shape
        assert e == self.embed_size
        n = 1
        for d in lead:
            n *= d
        x2d = hidden_state.reshape(n, e)
        out_dtype = hidden_state.dtype
        out_itemsize = jnp.dtype(out_dtype).itemsize
        c_pad = self._c_pad

        # Row tile: as large as practical (pipelining amortizes the ~0.35us/step
        # overhead), multiple of 8 sublanes; pad N so there is no ragged tile.
        tm = min(512, _round_up(max(n, 1), _SUBLANE))
        n_pad = pl.cdiv(max(n, 1), tm) * tm
        grid = (n_pad // tm,)

        # bf16 operands for the MXU; zero-pad rows (padded rows sliced off below).
        xb = x2d.astype(jnp.bfloat16)
        if n_pad != n:
            xb = jnp.pad(xb, ((0, n_pad - n), (0, 0)))

        row_spec = pl.BlockSpec((tm, e), lambda i: (i, 0))
        out_spec = pl.BlockSpec((tm, c_pad), lambda i: (i, 0))
        resident = lambda shape: pl.BlockSpec(shape, lambda i: (0, 0))
        out_shape = jax.ShapeDtypeStruct((n_pad, c_pad), out_dtype)

        if self.size == 'big':
            flops = 2 * n_pad * e * (e + c_pad)
            transcendentals = n_pad * e
            bytes_accessed = (n_pad * e * 2                    # x (bf16)
                              + e * e * 2 + e * 4              # w1 (bf16), b1 (f32)
                              + e * c_pad * 2 + c_pad * 4      # w2 (bf16), b2 (f32)
                              + n_pad * c_pad * out_itemsize)  # logits
            # 2x double-buffered row tiles + resident weights (+ headroom).
            vmem_est = (2 * tm * e * 2 + 2 * tm * c_pad * out_itemsize
                        + 2 * (e * e * 2 + e * 4 + e * c_pad * 2 + c_pad * 4))
        else:
            flops = 2 * n_pad * e * c_pad
            transcendentals = 0
            bytes_accessed = (n_pad * e * 2 + e * c_pad * 2 + c_pad * 4
                              + n_pad * c_pad * out_itemsize)
            vmem_est = (2 * tm * e * 2 + 2 * tm * c_pad * out_itemsize
                        + 2 * (e * c_pad * 2 + c_pad * 4))

        vmem_limit = int(min(max(2 * vmem_est + (4 << 20), 16 << 20), 64 << 20))
        compiler_params = pltpu.CompilerParams(
            dimension_semantics=("parallel",),
            vmem_limit_bytes=vmem_limit,
        )
        cost = pl.CostEstimate(flops=flops,
                               transcendentals=transcendentals,
                               bytes_accessed=bytes_accessed)

        if self.size == 'big':
            logits2d = pl.pallas_call(
                _head_big_kernel,
                out_shape=out_shape,
                grid_spec=pltpu.PrefetchScalarGridSpec(
                    num_scalar_prefetch=0,
                    grid=grid,
                    in_specs=[
                        row_spec,
                        resident((e, e)),
                        resident((1, e)),
                        resident((e, c_pad)),
                        resident((1, c_pad)),
                    ],
                    out_specs=out_spec,
                ),
                compiler_params=compiler_params,
                cost_estimate=cost,
            )(xb, self.w1, self.b1, self.w2, self.b2)
        else:
            logits2d = pl.pallas_call(
                _head_small_kernel,
                out_shape=out_shape,
                grid_spec=pltpu.PrefetchScalarGridSpec(
                    num_scalar_prefetch=0,
                    grid=grid,
                    in_specs=[
                        row_spec,
                        resident((e, c_pad)),
                        resident((1, c_pad)),
                    ],
                    out_specs=out_spec,
                ),
                compiler_params=compiler_params,
                cost_estimate=cost,
            )(xb, self.w2, self.b2)

        # Strip row padding and the lane padding on the class axis.
        logits2d = logits2d[:n, :self.num_classes]
        return logits2d.reshape(*lead, self.num_classes)


if __name__ == "__main__":
    # Small shapes consistent with a transformer-encoder classification head.
    batch, seq, embed, num_classes = 2, 8, 32, 6

    key = jax.random.PRNGKey(0)
    k_x, k_params = jax.random.split(key)
    hidden_state = jax.random.normal(k_x, (batch, seq, embed), jnp.float32)

    # bf16-rounded input (what the kernel feeds the MXU), upcast for f32 reference.
    xf = hidden_state.astype(jnp.bfloat16).astype(jnp.float32)

    # --- size='big' path (Dropout[eval] -> Linear -> Tanh -> Linear) ---
    head_big = ClassificationHead(num_classes, embed, 'big', key=k_params)
    logits_big = head_big(hidden_state)
    jax.block_until_ready(logits_big)

    w1f = head_big.w1.astype(jnp.float32)
    w2f = head_big.w2.astype(jnp.float32)[:, :num_classes]
    b2f = head_big.b2[:, :num_classes]
    h_ref = jnp.tanh(xf @ w1f + head_big.b1)
    ref_big = h_ref.astype(jnp.bfloat16).astype(jnp.float32) @ w2f + b2f
    assert logits_big.shape == (batch, seq, num_classes)
    assert jnp.allclose(logits_big, ref_big, atol=1e-3, rtol=1e-3), (
        float(jnp.max(jnp.abs(logits_big - ref_big))))

    # --- size='small' path (single Linear) ---
    head_small = ClassificationHead(num_classes, embed, 'small', key=k_params)
    logits_small = head_small(hidden_state)
    jax.block_until_ready(logits_small)

    w2f_s = head_small.w2.astype(jnp.float32)[:, :num_classes]
    b2f_s = head_small.b2[:, :num_classes]
    ref_small = xf @ w2f_s + b2f_s
    assert logits_small.shape == (batch, seq, num_classes)
    assert jnp.allclose(logits_small, ref_small, atol=1e-3, rtol=1e-3), (
        float(jnp.max(jnp.abs(logits_small - ref_small))))

    print("KERNEL_OK")
</pallas_src>

<mosaic_0001>
module attributes {stable_mosaic.version = 11 : i64} {
  func.func @_head_big_kernel(%arg0: i32, %arg1: memref<16x32xbf16, #tpu.memory_space<vmem>>, %arg2: memref<32x32xbf16, #tpu.memory_space<vmem>>, %arg3: memref<1x32xf32, #tpu.memory_space<vmem>>, %arg4: memref<32x128xbf16, #tpu.memory_space<vmem>>, %arg5: memref<1x128xf32, #tpu.memory_space<vmem>>, %arg6: memref<16x128xf32, #tpu.memory_space<vmem>>) attributes {dimension_semantics = [#tpu.dimension_semantics<parallel>], iteration_bounds = array<i64: 1>, scalar_prefetch = 0 : i64, scratch_operands = 0 : i64, tpu.core_type = #tpu.core_type<tc>, window_params = [{transform_indices = @transform_0, window_bounds = array<i64: 16, 32>}, {pipeline_mode = #tpu.pipeline_mode<synchronous>, transform_indices = @transform_1, window_bounds = array<i64: 32, 32>}, {pipeline_mode = #tpu.pipeline_mode<synchronous>, transform_indices = @transform_2, window_bounds = array<i64: 1, 32>}, {pipeline_mode = #tpu.pipeline_mode<synchronous>, transform_indices = @transform_3, window_bounds = array<i64: 32, 128>}, {pipeline_mode = #tpu.pipeline_mode<synchronous>, transform_indices = @transform_4, window_bounds = array<i64: 1, 128>}, {transform_indices = @transform_5, window_bounds = array<i64: 16, 128>}]} {
    %c0 = arith.constant 0 : index
    %c0_0 = arith.constant 0 : index
    %0 = vector.load %arg1[%c0, %c0_0] : memref<16x32xbf16, #tpu.memory_space<vmem>>, vector<16x32xbf16>
    %c0_1 = arith.constant 0 : index
    %c0_2 = arith.constant 0 : index
    %1 = vector.load %arg2[%c0_1, %c0_2] : memref<32x32xbf16, #tpu.memory_space<vmem>>, vector<32x32xbf16>
    %cst = arith.constant dense<0.000000e+00> : vector<16x32xf32>
    %2 = tpu.matmul %0, %1, %cst {dimension_numbers = #tpu.dot_dimension_numbers<[1], [0], [0], [1], [0, 0, 1, 1], [], []>} : vector<16x32xbf16>, vector<32x32xbf16>, vector<16x32xf32> -> vector<16x32xf32>
    %c0_3 = arith.constant 0 : index
    %c0_4 = arith.constant 0 : index
    %3 = vector.load %arg3[%c0_3, %c0_4] : memref<1x32xf32, #tpu.memory_space<vmem>>, vector<1x32xf32>
    %4 = vector.broadcast %3 : vector<1x32xf32> to vector<16x32xf32>
    %5 = arith.addf %2, %4 : vector<16x32xf32>
    %6 = math.tanh %5 : vector<16x32xf32>
    %7 = arith.truncf %6 : vector<16x32xf32> to vector<16x32xbf16>
    %c0_5 = arith.constant 0 : index
    %c0_6 = arith.constant 0 : index
    %8 = vector.load %arg4[%c0_5, %c0_6] : memref<32x128xbf16, #tpu.memory_space<vmem>>, vector<32x128xbf16>
    %cst_7 = arith.constant dense<0.000000e+00> : vector<16x128xf32>
    %9 = tpu.matmul %7, %8, %cst_7 {dimension_numbers = #tpu.dot_dimension_numbers<[1], [0], [0], [1], [0, 0, 1, 1], [], []>} : vector<16x32xbf16>, vector<32x128xbf16>, vector<16x128xf32> -> vector<16x128xf32>
    %c0_8 = arith.constant 0 : index
    %c0_9 = arith.constant 0 : index
    %10 = vector.load %arg5[%c0_8, %c0_9] : memref<1x128xf32, #tpu.memory_space<vmem>>, vector<1x128xf32>
    %11 = vector.broadcast %10 : vector<1x128xf32> to vector<16x128xf32>
    %12 = arith.addf %9, %11 : vector<16x128xf32>
    %c0_10 = arith.constant 0 : index
    %c0_11 = arith.constant 0 : index
    %13 = vector.load %arg6[%c0_10, %c0_11] : memref<16x128xf32, #tpu.memory_space<vmem>>, vector<16x128xf32>
    tpu.vector_store %arg6[%c0_10, %c0_11], %12 {strides = array<i32>} : memref<16x128xf32, #tpu.memory_space<vmem>>, vector<16x128xf32>,
    return
  }
  func.func @transform_0(%arg0: i32) -> (i32, i32) {
    %c0_i32 = arith.constant 0 : i32
    %c0_i32_0 = arith.constant 0 : i32
    return %arg0, %c0_i32 : i32, i32
  }
  func.func @transform_1(%arg0: i32) -> (i32, i32) {
    %c0_i32 = arith.constant 0 : i32
    %c0_i32_0 = arith.constant 0 : i32
    %c0_i32_1 = arith.constant 0 : i32
    return %c0_i32, %c0_i32_0 : i32, i32
  }
  func.func @transform_2(%arg0: i32) -> (i32, i32) {
    %c0_i32 = arith.constant 0 : i32
    %c0_i32_0 = arith.constant 0 : i32
    %c0_i32_1 = arith.constant 0 : i32
    return %c0_i32, %c0_i32_0 : i32, i32
  }
  func.func @transform_3(%arg0: i32) -> (i32, i32) {
    %c0_i32 = arith.constant 0 : i32
    %c0_i32_0 = arith.constant 0 : i32
    %c0_i32_1 = arith.constant 0 : i32
    return %c0_i32, %c0_i32_0 : i32, i32
  }
  func.func @transform_4(%arg0: i32) -> (i32, i32) {
    %c0_i32 = arith.constant 0 : i32
    %c0_i32_0 = arith.constant 0 : i32
    %c0_i32_1 = arith.constant 0 : i32
    return %c0_i32, %c0_i32_0 : i32, i32
  }
  func.func @transform_5(%arg0: i32) -> (i32, i32) {
    %c0_i32 = arith.constant 0 : i32
    %c0_i32_0 = arith.constant 0 : i32
    return %arg0, %c0_i32 : i32, i32
  }
}

</mosaic_0001>

<bundles_post_ra>
// kernel: tpu_custom_call.1
= control target key start
LH: loop header
LB: loop body
LE: loop exit
PB: predicated region body
PF: predicated region fallthrough
CT: control target
= control target key end

     0   :  { %10 = vsyncpa [#allocation3], 0  ;;  %s377_s0 = inlined_call_operand.hbm [shape: bf16[16,32], index: 0, kind: input, shape index: {}]   ;;  %s378_s1 = inlined_call_operand.hbm [shape: bf16[32,32], index: 1, kind: input, shape index: {}]   ;;  %s379_s2 = inlined_call_operand.vmem [shape: f32[1,32], index: 2, kind: input, shape index: {}]   ;;  %s380_s3 = inlined_call_operand.hbm [shape: bf16[32,128], index: 3, kind: input, shape index: {}]   ;;  %s381_s4 = inlined_call_operand.vmem [shape: f32[1,128], index: 4, kind: input, shape index: {}]   ;;  %s382_s5 = inlined_call_operand.hbm [shape: f32[16,128], index: 5, kind: output, shape index: {}]  }
   0x1   :  { %11 = vsyncpa [#allocation6], 0 }
   0x2   :  { %12 = vsyncpa [#allocation4], 0  ;;  %s30_s20 = sshll.u32 %s378_s1, 4  ;;  %s319_s21 = smov [#allocation5]   ;;  %s31_s20 = int_to_ptr.hbm [resolvable:$true] %s30_s20 }
   0x3   :  { %s32_s22 = sshll.u32 %s319_s21, 4  ;;  %s17_s25 = sshll.u32 %s377_s0, 4  ;;  %s33_s22 = int_to_ptr.vmem [resolvable:$true] %s32_s22  ;;  %s18_s25 = int_to_ptr.hbm [resolvable:$true] %s17_s25 }
   0x4   :  { %s320_s26 = smov 64   ;;  %s321_s27 = smov 4  }
   0x5   :  { %38 = dma.hbm_to_vmem [thread:$0]  %s31_s20, 256, %s33_s22, [#allocation6], %s320_s26, %s320_s26, %s321_s27  }
   0x6   :  { %s322_s28 = smov [#allocation2]   ;;  %s45_s7 = sshll.u32 %s380_s3, 4  ;;  %s46_s7 = int_to_ptr.hbm [resolvable:$true] %s45_s7 }
   0x7   :  { %s19_s29 = sshll.u32 %s322_s28, 4  ;;  %s323_s1 = smov [#allocation7]   ;;  %s20_s29 = int_to_ptr.vmem [resolvable:$true] %s19_s29 }
   0x8   :  { %25 = dma.hbm_to_vmem [thread:$0]  %s18_s25, 128, %s20_s29, [#allocation3], %s320_s26, %s320_s26, %s321_s27  }
   0x9   :  { %s47_s8 = sshll.u32 %s323_s1, 4  ;;  %s48_s8 = int_to_ptr.vmem [resolvable:$true] %s47_s8 }
   0xa   :  { %53 = dma.hbm_to_vmem [thread:$0]  %s46_s7, 256, %s48_s8, [#allocation6], %s320_s26, %s320_s26, %s321_s27  }
   0xb   :  { %313 = dma.done.wait [#allocation3], 128  }
   0xc   :  { %314 = vsyncadd [#allocation3], 4294967168 }
   0xd   :  { %315 = dma.done.wait [#allocation6], 512  }
   0xe   :  { %316 = vsyncadd [#allocation6], 4294966784  ;;  %v200_v0 = vld [vmem:[#allocation5 + $0x8] sm:$0xff]  ;;  %v199_v1 = vld [vmem:[#allocation5] sm:$0xff]  ;;  %vm96_vm0 = vcmask 261120   ;;  %s324_s11 = smov [#allocation8]  }
   0xf   :  { %106 = vmatpush.bf16.msra.mxu0 %v200_v0  ;;  %v198_v2 = vld [vmem:[#allocation2] sm:$0xff]  ;;  %v201_v4 = vld [vmem:[#allocation7] sm:$0xff]  ;;  %s160_s12 = sshll.u32 %s324_s11, 4  ;;  %s162_s14 = sshll.u32 %s382_s5, 4  ;;  %s161_s12 = int_to_ptr.vmem [resolvable:$true] %s160_s12  ;;  %s163_s14 = int_to_ptr.hbm [resolvable:$true] %s162_s14 }
  0x10   :  { %v202_v3 = vld [vmem:[#allocation7 + $0x8] sm:$0xff]  ;;  %s325_s15 = smov 128   ;;  %s326_s16 = smov 8  }
  0x11   :  { %146 = vmatpush.bf16.msra.mxu1 %v202_v3  ;;  %v211_v6 = vld [vmem:[%s379_s2] ss:$0 sm:$0xff] }
  0x12   :  { %v212_v13 = vld [vmem:[%s381_s4] ss:$0 sm:$0xff] }
  0x13   :  { %107 = vmatpush.bf16.msra.mxu0 %v199_v1 }
  0x15   :  { %147 = vmatpush.bf16.msra.mxu1 %v201_v4 }
  0x16   :  { %188 = vmatmul.msk.bf16.vlgmr.msra.gmra.mxu0 %vm96_vm0, %v198_v2 }
  0x93   :  { %v109_v5 = vpop.f32.mrf.mxu0 }
  0x94   :  { %v110_v7 = vadd.f32 %v211_v6, %v109_v5 }
  0x96   :  { %213 = vtanh.f32 %v110_v7 }
  0x9b   :  { %v111_v8 = vpop.f32.mrf.mxu0 }
  0x9c   :  { %v112_v9 = vadd.f32 %v211_v6, %v111_v8  ;;  %v214_v10 = vpop.eup %213 }
  0x9e   :  { %215 = vtanh.f32 %v112_v9 }
  0xa4   :  { %v216_v11 = vpop.eup %215 }
  0xa5   :  { %v116_v12 = vpack.c.bf16 %v216_v11, %v214_v10 }
  0xa7   :  { %197 = vmatmul.msk.bf16.vlgmr.msra.gmra.mxu1 %vm96_vm0, %v116_v12 }
 0x124   :  { %v149_v14 = vpop.f32.mrf.mxu1 }
 0x125   :  { %v150_v15 = vadd.f32 %v212_v13, %v149_v14 }
 0x127   :  { %154 = vst [vmem:[#allocation8] sm:$0xff] %v150_v15 }
 0x12c   :  { %v151_v16 = vpop.f32.mrf.mxu1 }
 0x12d   :  { %v152_v17 = vadd.f32 %v212_v13, %v151_v16 }
 0x12f   :  { %155 = vst [vmem:[#allocation8 + $0x8] sm:$0xff] %v152_v17 }
 0x130   :  { %168 = dma.vmem_to_hbm [thread:$0]  %s161_s12, 256, %s163_s14, [#allocation4], %s325_s15, %s325_s15, %s326_s16  }
 0x131   :  { %317 = dma.done.wait [#allocation4], 256  }
 0x132   :  { %318 = vsyncadd [#allocation4], 4294967040 }
 0x133   :  { %173 = vsyncpa [#allocation3], 1 }
 0x134   :  { %174 = vsyncpa [#allocation6], 1 }
 0x135   :  { %175 = vsyncpa [#allocation4], 1 }

</bundles_post_ra>
